<compile_context>
chip_gen: v5e
topology: v5e:2x2
jax: 0.10.0
libtpu: 0.0.40
codegen_flags: <defaults>
</compile_context>

<pallas_src>
import functools

import jax
import jax.numpy as jnp
from jax.experimental import pallas as pl
from jax.experimental.pallas import tpu as pltpu

EPS = 1e-5  # nn.LayerNorm default


def prenorm_kernel(x_ref, gamma_ref, beta_ref, w_ref, b_ref, o_ref, y_ref, *,
                   inv_d):
    # Grid: (i = row tile, j = hidden tile).  x / gamma / beta blocks are
    # constant across j, so Pallas keeps them resident.  LayerNorm runs only
    # on the first hidden tile of each row tile and its bf16 result (y_ref,
    # a VMEM scratch that persists across grid steps) is reused for all j.
    # NOTE: this reuse is only correct because j is the innermost grid axis
    # and is marked "arbitrary" (sequential); do not reorder the grid or mark
    # j parallel.
    @pl.when(pl.program_id(1) == 0)
    def _():
        x = x_ref[...].astype(jnp.float32)
        # One-pass LN statistics: sum(x) and sum(x*x) together.  Padded lanes
        # of x are zero, so dividing by the *true* D is exact.
        sum_x = jnp.sum(x, axis=-1, keepdims=True)
        sum_x2 = jnp.sum(x * x, axis=-1, keepdims=True)
        mean = sum_x * inv_d
        var = jnp.maximum(sum_x2 * inv_d - mean * mean, 0.0)
        x_hat = (x - mean) * jax.lax.rsqrt(var + EPS)    # EUP rsqrt
        y = x_hat * gamma_ref[...] + beta_ref[...]       # f32 VPU (v5e-safe)
        y_ref[...] = y.astype(y_ref.dtype)               # bf16 MXU operand

    # fn = Linear(dim -> hidden): bf16 x bf16 matmul, f32 accumulation.
    out = jnp.dot(y_ref[...], w_ref[...], preferred_element_type=jnp.float32)
    o_ref[...] = (out + b_ref[...]).astype(o_ref.dtype)


def _round_up(x, m):
    return ((x + m - 1) // m) * m


def _vmem_capacity_bytes():
    """Physical VMEM per core; conservative (v7x: 64 MiB) if the query fails."""
    try:
        info = pltpu.get_tpu_info()
        cap = getattr(info, "vmem_capacity_bytes", None)
        if cap:
            return int(cap)
    except Exception:
        pass
    return 64 * 1024 * 1024


def prenorm_linear(x, gamma, beta, w_t, b, *, tm=None, tn=None, out_dtype=None):
    """x: (B, S, D); gamma/beta: (D,); w_t: (D, H); b: (H,) -> (B, S, H)."""
    B, S, D = x.shape
    H = w_t.shape[1]
    N = B * S
    # Set out_dtype=jnp.bfloat16 to halve writeback if the consumer takes bf16.
    if out_dtype is None:
        out_dtype = x.dtype

    # ---- generation-aware VMEM budget ----
    vmem_cap = _vmem_capacity_bytes()
    big_vmem = vmem_cap >= 96 * 1024 * 1024           # v5e / v6e (128 MiB)
    budget = (96 if big_vmem else 40) * 1024 * 1024   # tile-footprint budget
    limit_cap = (100 if big_vmem else 52) * 1024 * 1024  # never all of v7x's 64 MiB

    # ---- feature dim: pad to lane width (zeros; LN uses the true-D divisor) ----
    Dp = _round_up(D, 128)

    # ---- hidden-dim tiling: prefer 512/256 (2x256^2 MXU), pad H up to tn ----
    if tn is None:
        if H <= 128:
            tn = 128
        elif H <= 256:
            tn = 256
        else:
            tn = 512
    assert tn % 128 == 0, "tn must be lane-dense (multiple of 128)"
    Hp = _round_up(H, tn)

    # ---- row tiling: large tiles for arithmetic intensity, >=2 tiles for megacore ----
    if tm is None:
        tm = 1024 if big_vmem else 512
        if N <= tm:
            # guarantee at least 2 row tiles (both v7x TCs get work) when N > 8
            tm = max(8, _round_up(-(-N // 2), 8))
    tm = _round_up(max(tm, 8), 8)

    xi = jnp.dtype(x.dtype).itemsize
    oi = jnp.dtype(out_dtype).itemsize

    def vmem_bytes(tm_):
        return (2 * tm_ * Dp * xi            # x row tile, double-buffered
                + tm_ * Dp * 2               # LayerNorm scratch (bf16)
                + 2 * Dp * tn * 2            # W column tile (bf16), double-buffered
                + 2 * tm_ * tn * oi          # output tile, double-buffered
                + 4 * Dp * 4 + 2 * tn * 4)   # gamma / beta / bias

    while vmem_bytes(tm) > budget and tm > 8:
        tm = max(8, _round_up(tm // 2, 8))

    Np = _round_up(N, tm)

    # ---- pad once outside the kernel (padded rows/cols dropped afterwards) ----
    x2 = x.reshape(N, D)
    if Np != N or Dp != D:
        x2 = jnp.pad(x2, ((0, Np - N), (0, Dp - D)))

    gamma2 = gamma.astype(jnp.float32)
    beta2 = beta.astype(jnp.float32)
    if Dp != D:
        gamma2 = jnp.pad(gamma2, (0, Dp - D))   # zeros -> y is 0 on padded lanes
        beta2 = jnp.pad(beta2, (0, Dp - D))
    gamma2 = gamma2.reshape(1, Dp)
    beta2 = beta2.reshape(1, Dp)

    w_bf = w_t.astype(jnp.bfloat16)
    b_p = b.astype(jnp.float32)
    if Dp != D or Hp != H:
        w_bf = jnp.pad(w_bf, ((0, Dp - D), (0, Hp - H)))
        b_p = jnp.pad(b_p, (0, Hp - H))
    b2 = b_p.reshape(1, Hp)

    grid = (Np // tm, Hp // tn)
    vmem_limit = min(max(int(vmem_bytes(tm) * 1.5) + (2 << 20),
                         32 * 1024 * 1024),
                     limit_cap)

    kernel = functools.partial(prenorm_kernel, inv_d=float(1.0 / D))

    out2 = pl.pallas_call(
        kernel,
        out_shape=jax.ShapeDtypeStruct((Np, Hp), out_dtype),
        grid_spec=pltpu.PrefetchScalarGridSpec(
            num_scalar_prefetch=0,
            grid=grid,
            in_specs=[
                pl.BlockSpec((tm, Dp), lambda i, j: (i, 0)),   # x tile (resident over j)
                pl.BlockSpec((1, Dp), lambda i, j: (0, 0)),    # gamma
                pl.BlockSpec((1, Dp), lambda i, j: (0, 0)),    # beta
                pl.BlockSpec((Dp, tn), lambda i, j: (0, j)),   # W^T column tile (bf16)
                pl.BlockSpec((1, tn), lambda i, j: (0, j)),    # bias tile
            ],
            out_specs=pl.BlockSpec((tm, tn), lambda i, j: (i, j)),
            scratch_shapes=[pltpu.VMEM((tm, Dp), jnp.bfloat16)],  # LN result reused over j
        ),
        compiler_params=pltpu.CompilerParams(
            # row axis megacore-shards on v7x; hidden axis must stay sequential
            # because the LN scratch carries state across j.
            dimension_semantics=("parallel", "arbitrary"),
            vmem_limit_bytes=vmem_limit),
    )(x2, gamma2, beta2, w_bf, b2)

    return out2[:N, :H].reshape(B, S, H)


if __name__ == "__main__":
    key = jax.random.PRNGKey(0)
    B, S, D, H = 2, 8, 32, 32  # batch, seq, in_channels, hidden of fn (smoke-test shape)

    kx, kw, kb = jax.random.split(key, 3)
    x = jax.random.normal(kx, (B, S, D), dtype=jnp.float32)

    # LayerNorm params (PyTorch init: gamma=1, beta=0)
    gamma = jnp.ones((D,), dtype=jnp.float32)
    beta = jnp.zeros((D,), dtype=jnp.float32)

    # fn = Linear(D, H) params, deterministic init
    w = jax.random.normal(kw, (H, D), dtype=jnp.float32) * 0.02  # PyTorch (out, in)
    b = jax.random.normal(kb, (H,), dtype=jnp.float32) * 0.02

    out = prenorm_linear(x, gamma, beta, w.T, b)
    out = jax.block_until_ready(out)

    # reference in plain f32 JAX (kernel feeds bf16 into the MXU -> loose tol)
    mean = jnp.mean(x, axis=-1, keepdims=True)
    var = jnp.mean((x - mean) ** 2, axis=-1, keepdims=True)
    xh = (x - mean) / jnp.sqrt(var + EPS)
    ref = (xh * gamma + beta) @ w.T + b
    assert out.shape == ref.shape
    assert jnp.allclose(out, ref, atol=1e-2, rtol=1e-2), "mismatch vs reference"

    print("KERNEL_OK")
</pallas_src>

<mosaic_0001>
module attributes {stable_mosaic.version = 11 : i64} {
  func.func @prenorm_kernel(%arg0: i32, %arg1: i32, %arg2: memref<8x128xf32, #tpu.memory_space<vmem>>, %arg3: memref<1x128xf32, #tpu.memory_space<vmem>>, %arg4: memref<1x128xf32, #tpu.memory_space<vmem>>, %arg5: memref<128x128xbf16, #tpu.memory_space<vmem>>, %arg6: memref<1x128xf32, #tpu.memory_space<vmem>>, %arg7: memref<8x128xf32, #tpu.memory_space<vmem>>, %arg8: memref<8x128xbf16, #tpu.memory_space<vmem>>) attributes {dimension_semantics = [#tpu.dimension_semantics<parallel>, #tpu.dimension_semantics<arbitrary>], iteration_bounds = array<i64: 2, 1>, scalar_prefetch = 0 : i64, scratch_operands = 1 : i64, tpu.core_type = #tpu.core_type<tc>, window_params = [{transform_indices = @transform_0, window_bounds = array<i64: 8, 128>}, {pipeline_mode = #tpu.pipeline_mode<synchronous>, transform_indices = @transform_1, window_bounds = array<i64: 1, 128>}, {pipeline_mode = #tpu.pipeline_mode<synchronous>, transform_indices = @transform_2, window_bounds = array<i64: 1, 128>}, {transform_indices = @transform_3, window_bounds = array<i64: 128, 128>}, {transform_indices = @transform_4, window_bounds = array<i64: 1, 128>}, {transform_indices = @transform_5, window_bounds = array<i64: 8, 128>}]} {
    %c0_i32 = arith.constant 0 : i32
    %0 = arith.cmpi eq, %arg1, %c0_i32 : i32
    %1 = arith.extui %0 : i1 to i32
    %c0_i32_0 = arith.constant 0 : i32
    %2 = arith.cmpi ne, %1, %c0_i32_0 : i32
    scf.if %2 {
      %c0_8 = arith.constant 0 : index
      %c0_9 = arith.constant 0 : index
      %10 = vector.load %arg2[%c0_8, %c0_9] : memref<8x128xf32, #tpu.memory_space<vmem>>, vector<8x128xf32>
      %cst_10 = arith.constant dense<0.000000e+00> : vector<8xf32>
      %11 = vector.multi_reduction <add>, %10, %cst_10 [1] : vector<8x128xf32> to vector<8xf32>
      %12 = vector.shape_cast %11 : vector<8xf32> to vector<8x1xf32>
      %13 = arith.mulf %10, %10 : vector<8x128xf32>
      %cst_11 = arith.constant dense<0.000000e+00> : vector<8xf32>
      %14 = vector.multi_reduction <add>, %13, %cst_11 [1] : vector<8x128xf32> to vector<8xf32>
      %15 = vector.shape_cast %14 : vector<8xf32> to vector<8x1xf32>
      %cst_12 = arith.constant 3.125000e-02 : f32
      %16 = vector.broadcast %cst_12 : f32 to vector<8x1xf32>
      %17 = arith.mulf %12, %16 : vector<8x1xf32>
      %cst_13 = arith.constant 3.125000e-02 : f32
      %18 = vector.broadcast %cst_13 : f32 to vector<8x1xf32>
      %19 = arith.mulf %15, %18 : vector<8x1xf32>
      %20 = arith.mulf %17, %17 : vector<8x1xf32>
      %21 = arith.subf %19, %20 : vector<8x1xf32>
      %cst_14 = arith.constant 0.000000e+00 : f32
      %22 = vector.broadcast %cst_14 : f32 to vector<8x1xf32>
      %23 = arith.maximumf %21, %22 : vector<8x1xf32>
      %24 = vector.broadcast %17 : vector<8x1xf32> to vector<8x128xf32>
      %25 = arith.subf %10, %24 : vector<8x128xf32>
      %cst_15 = arith.constant 9.99999974E-6 : f32
      %26 = vector.broadcast %cst_15 : f32 to vector<8x1xf32>
      %27 = arith.addf %23, %26 : vector<8x1xf32>
      %28 = math.rsqrt %27 : vector<8x1xf32>
      %29 = vector.broadcast %28 : vector<8x1xf32> to vector<8x128xf32>
      %30 = arith.mulf %25, %29 : vector<8x128xf32>
      %c0_16 = arith.constant 0 : index
      %c0_17 = arith.constant 0 : index
      %31 = vector.load %arg3[%c0_16, %c0_17] : memref<1x128xf32, #tpu.memory_space<vmem>>, vector<1x128xf32>
      %32 = vector.broadcast %31 : vector<1x128xf32> to vector<8x128xf32>
      %33 = arith.mulf %30, %32 : vector<8x128xf32>
      %c0_18 = arith.constant 0 : index
      %c0_19 = arith.constant 0 : index
      %34 = vector.load %arg4[%c0_18, %c0_19] : memref<1x128xf32, #tpu.memory_space<vmem>>, vector<1x128xf32>
      %35 = vector.broadcast %34 : vector<1x128xf32> to vector<8x128xf32>
      %36 = arith.addf %33, %35 : vector<8x128xf32>
      %37 = arith.truncf %36 : vector<8x128xf32> to vector<8x128xbf16>
      %c0_20 = arith.constant 0 : index
      %c0_21 = arith.constant 0 : index
      %38 = vector.load %arg8[%c0_20, %c0_21] : memref<8x128xbf16, #tpu.memory_space<vmem>>, vector<8x128xbf16>
      tpu.vector_store %arg8[%c0_20, %c0_21], %37 {strides = array<i32>} : memref<8x128xbf16, #tpu.memory_space<vmem>>, vector<8x128xbf16>,
    } else {
    }
    %c0 = arith.constant 0 : index
    %c0_1 = arith.constant 0 : index
    %3 = vector.load %arg8[%c0, %c0_1] : memref<8x128xbf16, #tpu.memory_space<vmem>>, vector<8x128xbf16>
    %c0_2 = arith.constant 0 : index
    %c0_3 = arith.constant 0 : index
    %4 = vector.load %arg5[%c0_2, %c0_3] : memref<128x128xbf16, #tpu.memory_space<vmem>>, vector<128x128xbf16>
    %cst = arith.constant dense<0.000000e+00> : vector<8x128xf32>
    %5 = tpu.matmul %3, %4, %cst {dimension_numbers = #tpu.dot_dimension_numbers<[1], [0], [0], [1], [0, 0, 1, 1], [], []>} : vector<8x128xbf16>, vector<128x128xbf16>, vector<8x128xf32> -> vector<8x128xf32>
    %c0_4 = arith.constant 0 : index
    %c0_5 = arith.constant 0 : index
    %6 = vector.load %arg6[%c0_4, %c0_5] : memref<1x128xf32, #tpu.memory_space<vmem>>, vector<1x128xf32>
    %7 = vector.broadcast %6 : vector<1x128xf32> to vector<8x128xf32>
    %8 = arith.addf %5, %7 : vector<8x128xf32>
    %c0_6 = arith.constant 0 : index
    %c0_7 = arith.constant 0 : index
    %9 = vector.load %arg7[%c0_6, %c0_7] : memref<8x128xf32, #tpu.memory_space<vmem>>, vector<8x128xf32>
    tpu.vector_store %arg7[%c0_6, %c0_7], %8 {strides = array<i32>} : memref<8x128xf32, #tpu.memory_space<vmem>>, vector<8x128xf32>,
    return
  }
  func.func @transform_0(%arg0: i32, %arg1: i32) -> (i32, i32) {
    %c0_i32 = arith.constant 0 : i32
    %c0_i32_0 = arith.constant 0 : i32
    return %arg0, %c0_i32 : i32, i32
  }
  func.func @transform_1(%arg0: i32, %arg1: i32) -> (i32, i32) {
    %c0_i32 = arith.constant 0 : i32
    %c0_i32_0 = arith.constant 0 : i32
    %c0_i32_1 = arith.constant 0 : i32
    return %c0_i32, %c0_i32_0 : i32, i32
  }
  func.func @transform_2(%arg0: i32, %arg1: i32) -> (i32, i32) {
    %c0_i32 = arith.constant 0 : i32
    %c0_i32_0 = arith.constant 0 : i32
    %c0_i32_1 = arith.constant 0 : i32
    return %c0_i32, %c0_i32_0 : i32, i32
  }
  func.func @transform_3(%arg0: i32, %arg1: i32) -> (i32, i32) {
    %c0_i32 = arith.constant 0 : i32
    %c0_i32_0 = arith.constant 0 : i32
    return %c0_i32, %arg1 : i32, i32
  }
  func.func @transform_4(%arg0: i32, %arg1: i32) -> (i32, i32) {
    %c0_i32 = arith.constant 0 : i32
    %c0_i32_0 = arith.constant 0 : i32
    return %c0_i32, %arg1 : i32, i32
  }
  func.func @transform_5(%arg0: i32, %arg1: i32) -> (i32, i32) {
    %c0_i32 = arith.constant 0 : i32
    return %arg0, %arg1 : i32, i32
  }
}

</mosaic_0001>

<bundles_post_ra>
// kernel: tpu_custom_call.1
= control target key start
LH: loop header
LB: loop body
LE: loop exit
PB: predicated region body
PF: predicated region fallthrough
CT: control target
= control target key end

     0   :  { %10 = vsyncpa [#allocation4], 0  ;;  %s1076_s0 = inlined_call_operand.hbm [shape: f32[16,128], index: 0, kind: input, shape index: {}]   ;;  %s1077_s1 = inlined_call_operand.hbm [shape: f32[1,128], index: 1, kind: input, shape index: {}]   ;;  %s1078_s2 = inlined_call_operand.vmem [shape: f32[1,128], index: 2, kind: input, shape index: {}]   ;;  %s1079_s3 = inlined_call_operand.hbm [shape: bf16[128,128], index: 3, kind: input, shape index: {}]   ;;  %s1080_s4 = inlined_call_operand.vmem [shape: f32[1,128], index: 4, kind: input, shape index: {}]   ;;  %s1081_s5 = inlined_call_operand.hbm [shape: f32[16,128], index: 5, kind: output, shape index: {}]  }
   0x1   :  { %12 = vsyncpa [#allocation4 + $0x1], 0 }
   0x2   :  { %13 = vsyncpa [#allocation7], 0 }
   0x3   :  { %14 = vsyncpa [#allocation5], 0 }
   0x4   :  { %16 = vsyncpa [#allocation5 + $0x1], 0  ;;  %s920_s18 = smov 0   ;;  %s922_s19 = smov 0  }
   0x5   :  { %s924_s20 = smov 0   ;;  %s926_s21 = smov 0  }
   0x6   :  { %s928_s22 = smov 0   ;;  %s930_s23 = smov 0  }
   0x7 LB: > { %s560_s24 = sadd.s32 4294967295, %s884_s23   ;;  %s561_s25 = sadd.s32 4294967294, %s884_s23   ;;  %s884_s23 = sphi %s930_s23, %s22_s23   ;;  %s880_s22 = sphi %s928_s22, %s1091_s22   ;;  %s876_s21 = sphi %s926_s21, %s1090_s21   ;;  %s872_s20 = sphi %s924_s20, %s1089_s20   ;;  %s868_s19 = sphi %s922_s19, %s1088_s19   ;;  %s864_s18 = sphi %s920_s18, %s1087_s18  }
   0x8   : > { %p54_p0 = scmp.ne.s32.totalorder %s868_s19, %s864_s18  ;;  %p956_p1 = scmp.eq.s32.totalorder %s560_s24, 0 }
   0x9   : > { %p180_p2 = scmp.eq.s32.totalorder %s561_s25, 1  ;;  %p562_p4 = scmp.ge.s32.totalorder %s884_s23, 1 }
   0xa   : > { %p962_p3 = por %p956_p1, %p54_p0  ;;  %p187_p6 = scmp.lt.s32.totalorder %s884_s23, 3 }
   0xb   : > { %p967_p5 = por %p180_p2, %p54_p0  ;;  %s199_s6 = sshll.u32 %s1077_s1, 4  ;;  %s200_s6 = int_to_ptr.hbm [resolvable:$true] %s199_s6 }
   0xc   : > { %p975_p7 = pnand %p562_p4, %p187_p6  ;;  %p566_p8 = scmp.ge.s32.totalorder %s884_s23, 2 }
   0xd   : > { %s886_s8 = smov [#allocation6]   ;;  %s215_s12 = sshll.u32 %s1079_s3, 4  ;;  %s216_s12 = int_to_ptr.hbm [resolvable:$true] %s215_s12 }
   0xe   : > { %p630_p9 = pneg %p975_p7  ;;  %s201_s9 = sshll.u32 %s886_s8, 4  ;;  %s202_s9 = int_to_ptr.vmem [resolvable:$true] %s201_s9 }
   0xf   : > { %s887_s13 = smov [#allocation8]   ;;  %s888_s15 = smov 64  }
  0x10   : > { %p631_p10 = pnand %p630_p9, %p956_p1  ;;  %s217_s14 = sshll.u32 %s887_s13, 4  ;;  %s218_s14 = int_to_ptr.vmem [resolvable:$true] %s217_s14 }
  0x11   : > { %s889_s16 = smov 4   ;;  %p174_p11 = scmp.eq.s32.totalorder %s560_s24, 1 }
  0x12   : > { %633 = dma.hbm_to_vmem [thread:$0]  (!%p631_p10), %s200_s6, 16, %s202_s9, [#allocation7]  }
  0x13   : > { %636 = dma.hbm_to_vmem [thread:$0]  (!%p631_p10), %s216_s12, 1024, %s218_s14, [#allocation7], %s888_s15, %s888_s15, %s889_s16  }
  0x14   : > { %s34_s17 = sadd.s32 1, %s880_s22  ;;  %s41_s25 = sadd.s32 1, %s872_s20 }
  0x15   : > { %p36_p12 = scmp.ge.s32.totalorder %s34_s17, 2  ;;  %p48_p13 = scmp.ne.s32.totalorder %s872_s20, %s868_s19 }
  0x16   : > { %p49_p0 = scmp.eq.s32.totalorder %s884_s23, 0  ;;  %p647_p4 = scmp.lt.s32.totalorder %s884_s23, 2 }
  0x17   : > { %s1093_s17 = smov (%p36_p12, %s34_s17), 0  ;;  %p996_p2 = por %p174_p11, %p48_p13 }
  0x18   : > { %s38_s30 = ssub.s32 %s880_s22, %s1093_s17  ;;  %s237_s6 = sand.u32 1, %s872_s20  }
  0x19   : > { %p39_p6 = scmp.eq.s32.totalorder %s38_s30, 0  ;;  %p50_p9 = por %p49_p0, %p48_p13 }
  0x1a   : > { %s567_s8 = sshll.u32 %s237_s6, 3  ;;  %s568_s24 = sshll.u32 %s880_s22, 3 }
  0x1b   : > { %s1006_s9 = scalar_select %p39_p6, %s872_s20, %s41_s25  }
  0x1c   : > { %s245_s12 = scalar_lea.hbm %s1076_s0, %s568_s24  ;;  %s241_s14 = scalar_lea.vmem [#allocation3], %s567_s8 }
  0x1d   : > { %s247_s13 = sshll.u32 %s245_s12, 4  ;;  %s249_s15 = sshll.u32 %s241_s14, 4  ;;  %s248_s13 = int_to_ptr.hbm [resolvable:$true] %s247_s13  ;;  %s250_s15 = int_to_ptr.vmem [resolvable:$true] %s249_s15 }
  0x1e   : > { %p638_p10 = pnand %p647_p4, %p50_p9  ;;  %s238_s16 = scalar_lea.sflag [#allocation4], %s237_s6 }
  0x1f   : > { %258 = sbr.rel (%p975_p7) target bundleno = 340 (0x154), region = 40  ;;  %s1016_s25 = sand.u32 (!%p975_p7), 1, %s868_s19  }
  0x20   : > { %640 = dma.hbm_to_vmem [thread:$0]  (!%p638_p10), %s248_s13, 128, %s250_s15, %s238_s16  }
  0x21   : > { %s570_s30 = sshll.u32 (!%p975_p7), %s1016_s25, 3  ;;  %s261_s24 = scalar_lea.sflag (!%p975_p7), [#allocation4], %s1016_s25 }
  0x22   : > { %s264_s8 = scalar_lea.vmem (!%p975_p7), [#allocation3], %s570_s30 }
  0x24   : > { %851 = dma.done.wait (%p962_p3), %s261_s24, 128  }
  0x25   : > { %853 = vsyncadd (%p962_p3), %s261_s24, 4294967168 }
  0x26   : > { %855 = dma.done.wait (%p956_p1), [#allocation7], 1040  }
  0x27   : > { %857 = vsyncadd (%p956_p1), [#allocation7], 4294966256  ;;  %v312_v0 = vld [vmem:[%s264_s8] sm:$0xff]  ;;  %v614_v5 = vld [vmem:[#allocation8 + $0x20] sm:$0xff]  ;;  %s607_s7 = sshll.u32 %s876_s21, 3  ;;  %s304_s14 = scalar_lea.vmem [#allocation9], %s570_s30 }
  0x28   : > { %313 = vadd.xlane.f32.xlu0 %v312_v0  ;;  %v315_v1 = vmul.f32 %v312_v0, %v312_v0  ;;  %v617_v2 = vld [vmem:[#allocation8 + $0x38] sm:$0xff]  ;;  %v616_v3 = vld [vmem:[#allocation8 + $0x30] sm:$0xff]  ;;  %v615_v4 = vld [vmem:[#allocation8 + $0x28] sm:$0xff]  ;;  %s443_s11 = scalar_lea.hbm %s1081_s5, %s607_s7  ;;  %s445_s15 = sshll.u32 %s304_s14, 4  ;;  %s446_s15 = int_to_ptr.vmem [resolvable:$true] %s445_s15 }
  0x29   : > { %417 = vmatpush.bf16.msra.mxu0 %v617_v2  ;;  %v613_v7 = vld [vmem:[#allocation8 + $0x18] sm:$0xff]  ;;  %v612_v9 = vld [vmem:[#allocation8 + $0x10] sm:$0xff]  ;;  %v611_v13 = vld [vmem:[#allocation8 + $0x8] sm:$0xff]  ;;  %s447_s16 = sshll.u32 %s443_s11, 4  ;;  %s432_s24 = scalar_lea.sflag [#allocation5], %s1016_s25  ;;  %s448_s16 = int_to_ptr.hbm [resolvable:$true] %s447_s16 }
  0x2a   : > { %v610_v15 = vld [vmem:[#allocation8] sm:$0xff]  ;;  %v703_v25 = vld [vmem:[#allocation6] ss:$0 sm:$0xff]  ;;  %v704_v27 = vld [vmem:[%s1078_s2] ss:$0 sm:$0xff]  ;;  %s812_s21 = sshra.s32 %s448_s16, 4  ;;  %s813_s21 = int_to_ptr.hbm [resolvable:$true] %s812_s21 }
  0x2b   : > { %v705_v33 = vld [vmem:[%s1080_s4] ss:$0 sm:$0xff]  ;;  %s814_s8 = scalar_lea.hbm %s813_s21, 8  ;;  %s818_s7 = scalar_lea.hbm %s1081_s5, 16 }
  0x2c   : > { %p815_p1 = scmp.ne.s32.totalorder %s813_s21, %s814_s8  ;;  %p819_p11 = scmp.lt.s32.totalorder %s813_s21, %s1081_s5 }
  0x2d   : > { %418 = vmatpush.bf16.msra.mxu0 %v616_v3  ;;  %p820_p12 = scmp.lt.s32.totalorder %s818_s7, %s814_s8 }
  0x2e   : > { %p816_p3 = pnand %p815_p1, %p996_p2 }
  0x2f   : > { %p821_p13 = por %p820_p12, %p819_p11 }
  0x30   : > { %316 = vadd.xlane.f32.xlu0 %v315_v1  ;;  %p817_p7 = pneg %p816_p3 }
  0x31   : > { %419 = vmatpush.bf16.msra.mxu0 %v615_v4 }
  0x32   : > { %p822_p0 = pnand %p821_p13, %p817_p7 }
  0x35   : > { %420 = vmatpush.bf16.msra.mxu0 %v614_v5 }
  0x39   : > { %421 = vmatpush.bf16.msra.mxu0 %v613_v7 }
  0x3d   : > { %422 = vmatpush.bf16.msra.mxu0 %v612_v9 }
  0x41   : > { %423 = vmatpush.bf16.msra.mxu0 %v611_v13 }
  0x45   : > { %424 = vmatpush.bf16.msra.mxu0 %v610_v15 }
  0x9b   : > { %v314_v6 = vpop.xlane.xlu0 %313 }
  0x9c   : > { %v318_v8 = vmul.f32 0.03125, %v314_v6 }
  0x9e   : > { %v320_v11 = vmul.f32 %v318_v8, %v318_v8  ;;  %v323_v24 = vsub.f32 %v312_v0, %v318_v8 }
  0xa3   : > { %v317_v10 = vpop.xlane.xlu0 %316 }
  0xa4   : > { %v319_v12 = vmul.f32 0.03125, %v317_v10 }
  0xa6   : > { %v321_v14 = vsub.f32 %v319_v12, %v320_v11 }
  0xa8   : > { %v322_v16 = vmax.f32 %v321_v14, 0.0 }
  0xaa   : > { %v324_v17 = vadd.f32 1e-05, %v322_v16 }
  0xac   : > { %706 = vrsqrt.f32 %v324_v17  ;;  %vm331_vm1 = vweird.f32 %v324_v17 }
  0xb2   : > { %v707_v18 = vpop.eup %706 }
  0xb3   : > { %v326_v19 = vmul.f32 %v707_v18, %v324_v17  ;;  %vm332_vm0 = vweird.f32 %v707_v18 }
  0xb4   : > { %vm333_vm2 = vmor %vm331_vm1, %vm332_vm0 }
  0xb5   : > { %v327_v20 = vmul.f32 %v707_v18, %v326_v19 }
  0xb7   : > { %v328_v21 = vmul.f32 0.5, %v327_v20 }
  0xb9   : > { %v329_v22 = vsub.f32 1.5, %v328_v21 }
  0xbb   : > { %v330_v23 = vmul.f32 %v707_v18, %v329_v22 }
  0xbd   : > { %v334_v26 = vsel %vm333_vm2, %v707_v18, %v330_v23 }
  0xbe   : > { %v335_v28 = vmul.f32 %v334_v26, %v323_v24 }
  0xc0   : > { %v340_v29 = vmul.f32 %v703_v25, %v335_v28 }
  0xc2   : > { %v345_v30 = vadd.f32 %v704_v27, %v340_v29 }
  0xc4   : > { %v346_v31 = vpack.c.bf16 %v345_v30, %v345_v30 }
  0xc6   : > { %347 = vst [vmem:[#allocation2] sm:$0xf] %v346_v31 }
  0xcd   : > { %v348_v32 = vld [vmem:[#allocation2] sm:$0xf] }
  0xce   : > { %425 = vmatmul.bf16.vlgmr.msra.gmra.mxu0 %v348_v32 }
 0x14b   : > { %v426_v34 = vpop.f32.mrf.mxu0 }
 0x14c   : > { %v427_v35 = vadd.f32 %v705_v33, %v426_v34 }
 0x14e   : > { %430 = vst [vmem:[%s304_s14] sm:$0xff] %v427_v35 }
 0x14f   : > { %825 = shalt.err (!%p822_p0)
}
 0x150   : > { %628 = dma.vmem_to_hbm [thread:$0]  (%p996_p2), %s446_s15, 128, %s448_s16, %s432_s24  }
 0x153   : > { %v428_v36 = vpop.f32.mrf.mxu0 }
 0x154 PF: > { %s459_s25 = sand.u32 1, %s864_s18   ;;  %p642_p4 = pnand %p566_p8, %p967_p5 }
 0x155   : > { %s460_s10 = scalar_lea.sflag [#allocation5], %s459_s25 }
 0x156   : > { %p643_p6 = pneg %p642_p4 }
 0x158   : > { %859 = dma.done.wait (%p643_p6), %s460_s10, 128  }
 0x159   : > { %861 = vsyncadd (%p643_p6), %s460_s10, 4294967168  ;;  %s22_s23 = sadd.s32 1, %s884_s23   ;;  %s1087_s18 = smov %s868_s19 }
 0x15a   : > { %p19_p9 = scmp.ge.s32.totalorder %s22_s23, 4   ;;  %s1088_s19 = smov %s872_s20 }
 0x15b   : > { %s1089_s20 = smov %s1006_s9  ;;  %s1090_s21 = smov %s880_s22 }
 0x15c   : > { %s1091_s22 = smov %s1093_s17  ;;  %21 = sbr.rel (!%p19_p9) target bundleno = 7 (0x7), region = 101 }
 0x161   :  { %466 = vsyncpa [#allocation4], 1 }
 0x162   :  { %468 = vsyncpa [#allocation4 + $0x1], 1 }
 0x163   :  { %469 = vsyncpa [#allocation7], 1 }
 0x164   :  { %470 = vsyncpa [#allocation5], 1 }
 0x165   :  { %472 = vsyncpa [#allocation5 + $0x1], 1 }

</bundles_post_ra>
